<compile_context>
chip_gen: v7x
topology: tpu7x:2x2x1
jax: 0.10.0
libtpu: 0.0.40
codegen_flags: <defaults>
</compile_context>

<pallas_src>
import functools

import jax
import jax.numpy as jnp
from jax import lax
from jax.experimental import pallas as pl
from jax.experimental.pallas import tpu as pltpu

BOX_THRESHOLD = 0.45
TEXT_THRESHOLD = 0.4   # text/label filtering is string handling -> not modelled


# --------------------------------------------------------------------------
# Pallas kernel: feats = where(nearest_resize(rect_mask(box)), token_embed, 0)
# --------------------------------------------------------------------------
def _mask_feats_kernel(box_ref, x_ref, o_ref, *, he, we, h_img, w_img):
    """Lane-dense masked copy of one channel tile.

    box_ref : SMEM (4,) f32 -- effective [x1, y1, x2, y2] in image pixels.
              The wrapper already folded the "no detection" zeros / identity
              fallback into these coordinates (empty / full rectangle), so the
              kernel body is a branch-free load-select-store.
    x_ref / o_ref : (cb, he*we) VMEM blocks in the embedding's native dtype;
              (He, We) is flattened onto the lane axis -> unmasked vst stores.
    """
    hw = he * we
    p_we = we.bit_length() - 1          # he, we are powers of two (asserted)
    p_he = he.bit_length() - 1
    k = lax.broadcasted_iota(jnp.int32, (1, hw), 1)
    i = k >> p_we                       # embedding row index
    j = k & (we - 1)                    # embedding col index
    # Nearest-neighbour source pixel floor(dst * src_size / dst_size) --
    # identical to F.interpolate(mode='nearest') on the full-res mask.
    row_src = ((i * h_img) >> p_he).astype(jnp.float32)
    col_src = ((j * w_img) >> p_we).astype(jnp.float32)
    x1 = box_ref[0]
    y1 = box_ref[1]
    x2 = box_ref[2]
    y2 = box_ref[3]
    m = ((col_src >= x1) & (col_src < x2) &
         (row_src >= y1) & (row_src < y2))          # (1, hw) bool, stays bool
    x = x_ref[...]
    # Boolean select: no mask cast, no multiply; mask rebuild is free filler
    # under the block DMA (the kernel is HBM-bandwidth bound).
    o_ref[...] = jnp.where(m, x, jnp.zeros_like(x))


def _pick_channel_tile(c, hw, dtype, target=128,
                       vmem_block_budget=8 * 1024 * 1024):
    """Channel tile: dtype-sublane aligned, VMEM-safe, grid >= 2 when possible."""
    itemsize = jnp.dtype(dtype).itemsize
    align = max(8, 32 // max(itemsize, 1))       # 8 f32 / 16 bf16 / 32 int8
    if c <= align:
        return c                                  # single full-extent block
    # Cap so in+out double-buffered blocks (~4 resident copies) stay far below
    # the scoped VMEM default on every generation (incl. v7x's 64 MiB phys).
    vmem_cap = max(align,
                   (vmem_block_budget // (4 * hw * itemsize)) // align * align)
    tile = min(target, vmem_cap, c)
    if tile >= c:
        # Prefer >= 2 grid steps so v7x's two TensorCores both get channels.
        tile = max(align, (c // 2) // align * align)
    return max(align, tile // align * align)


def masked_features(x2d, eff_box_xyxy, he, we, h_img, w_img, target_tile=128):
    """x2d: (C, He*We) native dtype, eff_box_xyxy: (4,) f32 -> (C, He*We)."""
    assert (he & (he - 1)) == 0 and (we & (we - 1)) == 0, (
        "shift-based nearest-neighbour indexing assumes power-of-two embedding "
        "dims (SAM2 uses 64x64)")  # TODO(synk): general sizes need int div/mod
    c, hw = x2d.shape
    cb = _pick_channel_tile(c, hw, x2d.dtype, target=target_tile)
    kernel = functools.partial(_mask_feats_kernel, he=he, we=we,
                               h_img=h_img, w_img=w_img)
    return pl.pallas_call(
        kernel,
        out_shape=jax.ShapeDtypeStruct((c, hw), x2d.dtype),
        grid=(pl.cdiv(c, cb),),
        in_specs=[
            pl.BlockSpec(memory_space=pltpu.SMEM),       # effective box (4,)
            pl.BlockSpec((cb, hw), lambda g: (g, 0)),    # embedding tile
        ],
        out_specs=pl.BlockSpec((cb, hw), lambda g: (g, 0)),
        compiler_params=pltpu.CompilerParams(
            dimension_semantics=("parallel",)),          # v7x: 2 TCs share C
    )(eff_box_xyxy, x2d)


# --------------------------------------------------------------------------
# Forward wrapper: mirrors GroundedSAM2.forward post-backbone semantics
# --------------------------------------------------------------------------
def grounded_sam2_forward(token_embed, boxes, confidences, image_size,
                          fully_masked=True, return_mask=False):
    """token_embed: (1, C, He, We) native dtype (SAM2 image-embedding stand-in)
       boxes:       (N, 4) f32 normalized cxcywh (GroundingDINO output stand-in)
       confidences: (N,)  f32
       image_size:  (w, h) like PIL Image.size (static Python ints)
    """
    w, h = image_size
    conf = confidences.astype(jnp.float32)

    # predict() keeps boxes whose confidence exceeds BOX_THRESHOLD;
    # "no boxes" <=> nothing passes the threshold.
    has_box = jnp.any(conf > BOX_THRESHOLD)

    # best_boxes = boxes[conf.argmax()] : ~900-element argmax -> plain XLA
    # (a dedicated pallas_call here costs more than it saves, per review).
    best_cxcywh = jnp.take(boxes.astype(jnp.float32), jnp.argmax(conf), axis=0)

    # box_convert(best * [w,h,w,h], 'cxcywh' -> 'xyxy') : 8 scalar flops.
    b = best_cxcywh * jnp.array([w, h, w, h], jnp.float32)
    box_xyxy = jnp.concatenate([b[:2] - 0.5 * b[2:], b[:2] + 0.5 * b[2:]])

    # TODO(synk): SAM2ImagePredictor.predict (promptable mask decoder) has no
    # Pallas equivalent; stand in with the rectangle mask implied by box_xyxy.

    # Fold the "no detection" fallback into the box coords so the hot kernel
    # is branch-free:
    #   no box & fully_masked      -> empty rectangle -> zeros_like(token_embed)
    #   no box & not fully_masked  -> full  rectangle -> token_embed unchanged
    if fully_masked:
        fallback = jnp.zeros((4,), jnp.float32)
    else:
        fallback = jnp.array([-1.0, -1.0, w + 1.0, h + 1.0], jnp.float32)
    eff_box = jnp.where(has_box, box_xyxy, fallback).astype(jnp.float32)

    _, C, He, We = token_embed.shape
    x2d = token_embed[0].reshape(C, He * We)           # native dtype, lane-dense
    feats = masked_features(x2d, eff_box, He, We, h, w).reshape(1, C, He, We)

    if return_mask:
        # Full-resolution mask (only on request), gated on has_box so a
        # below-threshold box never leaks a mask (torch returns None there).
        ys = jnp.arange(h, dtype=jnp.float32)[:, None]
        xs = jnp.arange(w, dtype=jnp.float32)[None, :]
        rect = ((xs >= box_xyxy[0]) & (xs < box_xyxy[2]) &
                (ys >= box_xyxy[1]) & (ys < box_xyxy[3]))
        mask_full = jnp.where(has_box, rect, False).astype(jnp.float32)
        return feats, mask_full
    return feats, None


# --------------------------------------------------------------------------
# Pure-JAX reference for correctness checking
# --------------------------------------------------------------------------
def _reference(token_embed, boxes, confidences, image_size, fully_masked=True):
    w, h = image_size
    conf = confidences.astype(jnp.float32)
    if not bool(jnp.any(conf > BOX_THRESHOLD)):
        return jnp.zeros_like(token_embed) if fully_masked else token_embed
    b = boxes[jnp.argmax(conf)].astype(jnp.float32) * jnp.array(
        [w, h, w, h], jnp.float32)
    x1, y1 = b[0] - 0.5 * b[2], b[1] - 0.5 * b[3]
    x2, y2 = b[0] + 0.5 * b[2], b[1] + 0.5 * b[3]
    _, C, He, We = token_embed.shape
    rows = ((jnp.arange(He) * h) // He).astype(jnp.float32)[:, None]
    cols = ((jnp.arange(We) * w) // We).astype(jnp.float32)[None, :]
    m = (cols >= x1) & (cols < x2) & (rows >= y1) & (rows < y2)
    return jnp.where(m[None, None], token_embed, jnp.zeros_like(token_embed))


if __name__ == "__main__":
    key = jax.random.PRNGKey(0)
    k1, k2, k3 = jax.random.split(key, 3)

    B, C, HE, WE = 1, 32, 16, 16          # small SAM2 embedding (real: 1,256,64,64)
    W_IMG, H_IMG = 48, 64                 # small image, size = (w, h)
    N_BOXES = 8                           # real GroundingDINO emits ~900 queries

    token_f32 = jax.random.normal(k1, (B, C, HE, WE), jnp.float32)
    token_bf16 = token_f32.astype(jnp.bfloat16)        # native-dtype hot path
    boxes = jax.random.uniform(k2, (N_BOXES, 4), jnp.float32,
                               minval=0.1, maxval=0.6)  # normalized cxcywh
    confidences = jax.random.uniform(k3, (N_BOXES,), jnp.float32,
                                     minval=0.0, maxval=1.0)
    confidences = confidences.at[3].set(0.9)            # guarantee a detection
    conf_low = confidences * 0.3                        # guarantee no detection

    fwd = jax.jit(grounded_sam2_forward,
                  static_argnames=("image_size", "fully_masked", "return_mask"))

    # Case 1: bf16 native-dtype path, detection present, fully_masked=True.
    feats1, _ = fwd(token_bf16, boxes, confidences, image_size=(W_IMG, H_IMG),
                    fully_masked=True)
    jax.block_until_ready(feats1)
    ref1 = _reference(token_bf16, boxes, confidences, (W_IMG, H_IMG),
                      fully_masked=True)
    assert feats1.shape == (B, C, HE, WE) and feats1.dtype == jnp.bfloat16
    assert jnp.array_equal(feats1, ref1), "bf16 masked-features mismatch"

    # Case 2: f32 path, no detection, fully_masked=False -> identity fallback.
    feats2, _ = fwd(token_f32, boxes, conf_low, image_size=(W_IMG, H_IMG),
                    fully_masked=False)
    jax.block_until_ready(feats2)
    ref2 = _reference(token_f32, boxes, conf_low, (W_IMG, H_IMG),
                      fully_masked=False)
    assert feats2.dtype == jnp.float32
    assert jnp.array_equal(feats2, ref2), "f32 fallback mismatch"

    print("KERNEL_OK")
</pallas_src>

<mosaic_0001>
module attributes {stable_mosaic.version = 11 : i64} {
  func.func @_mask_feats_kernel(%arg0: i32, %arg1: memref<4xf32, #tpu.memory_space<smem>>, %arg2: memref<16x256xbf16, #tpu.memory_space<vmem>>, %arg3: memref<16x256xbf16, #tpu.memory_space<vmem>>) attributes {dimension_semantics = [#tpu.dimension_semantics<parallel>], iteration_bounds = array<i64: 2>, scalar_prefetch = 0 : i64, scratch_operands = 0 : i64, tpu.core_type = #tpu.core_type<tc>, window_params = [{transform_indices = @transform_0, window_bounds = array<i64: 4>}, {transform_indices = @transform_1, window_bounds = array<i64: 16, 256>}, {transform_indices = @transform_2, window_bounds = array<i64: 16, 256>}]} {
    %0 = tpu.iota {dimensions = array<i32: 1>} : vector<1x256xi32>
    %c4_i32 = arith.constant 4 : i32
    %1 = vector.broadcast %c4_i32 : i32 to vector<1x256xi32>
    %2 = arith.shrsi %0, %1 : vector<1x256xi32>
    %c15_i32 = arith.constant 15 : i32
    %3 = vector.broadcast %c15_i32 : i32 to vector<1x256xi32>
    %4 = arith.andi %0, %3 : vector<1x256xi32>
    %c64_i32 = arith.constant 64 : i32
    %5 = vector.broadcast %c64_i32 : i32 to vector<1x256xi32>
    %6 = arith.muli %2, %5 : vector<1x256xi32>
    %c4_i32_0 = arith.constant 4 : i32
    %7 = vector.broadcast %c4_i32_0 : i32 to vector<1x256xi32>
    %8 = arith.shrsi %6, %7 : vector<1x256xi32>
    %9 = arith.sitofp %8 : vector<1x256xi32> to vector<1x256xf32>
    %c48_i32 = arith.constant 48 : i32
    %10 = vector.broadcast %c48_i32 : i32 to vector<1x256xi32>
    %11 = arith.muli %4, %10 : vector<1x256xi32>
    %c4_i32_1 = arith.constant 4 : i32
    %12 = vector.broadcast %c4_i32_1 : i32 to vector<1x256xi32>
    %13 = arith.shrsi %11, %12 : vector<1x256xi32>
    %14 = arith.sitofp %13 : vector<1x256xi32> to vector<1x256xf32>
    %c0 = arith.constant 0 : index
    %15 = memref.load %arg1[%c0] : memref<4xf32, #tpu.memory_space<smem>>
    %c1 = arith.constant 1 : index
    %16 = memref.load %arg1[%c1] : memref<4xf32, #tpu.memory_space<smem>>
    %c2 = arith.constant 2 : index
    %17 = memref.load %arg1[%c2] : memref<4xf32, #tpu.memory_space<smem>>
    %c3 = arith.constant 3 : index
    %18 = memref.load %arg1[%c3] : memref<4xf32, #tpu.memory_space<smem>>
    %19 = vector.broadcast %15 : f32 to vector<1x256xf32>
    %20 = arith.cmpf oge, %14, %19 : vector<1x256xf32>
    %21 = vector.broadcast %17 : f32 to vector<1x256xf32>
    %22 = arith.cmpf olt, %14, %21 : vector<1x256xf32>
    %23 = arith.andi %20, %22 : vector<1x256xi1>
    %24 = vector.broadcast %16 : f32 to vector<1x256xf32>
    %25 = arith.cmpf oge, %9, %24 : vector<1x256xf32>
    %26 = arith.andi %23, %25 : vector<1x256xi1>
    %27 = vector.broadcast %18 : f32 to vector<1x256xf32>
    %28 = arith.cmpf olt, %9, %27 : vector<1x256xf32>
    %29 = arith.andi %26, %28 : vector<1x256xi1>
    %c0_2 = arith.constant 0 : index
    %c0_3 = arith.constant 0 : index
    %30 = vector.load %arg2[%c0_2, %c0_3] : memref<16x256xbf16, #tpu.memory_space<vmem>>, vector<16x256xbf16>
    %cst = arith.constant 0.000000e+00 : bf16
    %31 = vector.broadcast %cst : bf16 to vector<16x256xbf16>
    %32 = vector.shape_cast %29 : vector<1x256xi1> to vector<1x256xi1>
    %33 = vector.broadcast %32 : vector<1x256xi1> to vector<16x256xi1>
    %34 = arith.select %33, %30, %31 : vector<16x256xi1>, vector<16x256xbf16>
    %c0_4 = arith.constant 0 : index
    %c0_5 = arith.constant 0 : index
    %35 = vector.load %arg3[%c0_4, %c0_5] : memref<16x256xbf16, #tpu.memory_space<vmem>>, vector<16x256xbf16>
    tpu.vector_store %arg3[%c0_4, %c0_5], %34 {strides = array<i32>} : memref<16x256xbf16, #tpu.memory_space<vmem>>, vector<16x256xbf16>,
    return
  }
  func.func @transform_0(%arg0: i32) -> i32 {
    %c0_i32 = arith.constant 0 : i32
    %c0_i32_0 = arith.constant 0 : i32
    return %c0_i32 : i32
  }
  func.func @transform_1(%arg0: i32) -> (i32, i32) {
    %c0_i32 = arith.constant 0 : i32
    %c0_i32_0 = arith.constant 0 : i32
    return %arg0, %c0_i32 : i32, i32
  }
  func.func @transform_2(%arg0: i32) -> (i32, i32) {
    %c0_i32 = arith.constant 0 : i32
    %c0_i32_0 = arith.constant 0 : i32
    return %arg0, %c0_i32 : i32, i32
  }
}

</mosaic_0001>

<bundles_post_ra>
// kernel: grounded_sam2_forward.1
= control target key start
LH: loop header
LB: loop body
LE: loop exit
PB: predicated region body
PF: predicated region fallthrough
CT: control target
= control target key end

     0   :  { %7 = vsyncpa [#allocation3], 0  ;;  %s371_s9 = smov 0   ;;  %s424_s0 = inlined_call_operand.vmem [shape: f32[4], index: 0, kind: input, shape index: {}]   ;;  %s425_s1 = inlined_call_operand.vmem [shape: bf16[32,256], index: 1, kind: input, shape index: {}]   ;;  %s426_s2 = inlined_call_operand.vmem [shape: bf16[32,256], index: 2, kind: output, shape index: {}]  }
   0x1 LB: > { %s289_s10 = sadd.s32 4294967295, %s353_s9   ;;  %p291_p0 = scmp.ge.s32.totalorder %s353_s9, 1  ;;  %s353_s9 = sphi %s371_s9, %s13_s9  }
   0x2   : > { %p91_p1 = scmp.lt.s32.totalorder %s353_s9, 3  ;;  %s104_s13 = sshll.u32 %s424_s0, 4  ;;  %s105_s13 = int_to_ptr.vmem [resolvable:$true] %s104_s13 }
   0x3   : > { %p386_p3 = scmp.eq.s32.totalorder %s289_s10, 0  ;;  %s328_s16 = scalar_lea.vmem %s105_s13, 16 }
   0x4   : > { %p382_p2 = pnand %p291_p0, %p91_p1  ;;  %p329_p6 = scmp.ne.s32.totalorder %s105_s13, %s328_s16 }
   0x5   : > { %p336_p10 = scmp.lt.s32.totalorder %s105_s13, %s105_s13  ;;  %p337_p11 = scmp.lt.s32.totalorder %s328_s16, %s328_s16 }
   0x6   : > { %p313_p4 = pneg %p382_p2 }
   0x7   : > { %p338_p12 = por %p337_p11, %p336_p10 }
   0x8   : > { %p314_p5 = pnand %p386_p3, %p313_p4 }
   0xa   : > { %p330_p7 = pneg %p314_p5 }
   0xc   : > { %p331_p8 = pnand %p330_p7, %p329_p6 }
   0xe   : > { %p332_p9 = pneg %p331_p8 }
  0x10   : > { %p339_p13 = pnand %p338_p12, %p332_p9 }
  0x12   : > { %342 = shalt.err (!%p339_p13)
}
  0x13   : > { %s355_s17 = smov [#allocation2]   ;;  %127 = sbr.rel (%p382_p2) target bundleno = 51 (0x33), region = 28 }
  0x14   : > { %316 = dma.vmem_to_smem (!%p314_p5), %s105_s13, 16, %s355_s17, [#allocation3]  }
  0x1a   : > { %348 = dma.done.wait (%p386_p3), [#allocation3], 16  }
  0x1b   : > { %350 = vsyncadd (%p386_p3), [#allocation3], 4294967280 }
  0x1c   : > { %133 = sfence }
  0x1d   : > { %s296_s18 = sshll.u32 %s289_s10, 1  ;;  %v167_v0 = vlaneseq  ;;  %s400_s19 = sld [smem:[#allocation2]] }
  0x1e   : > { %s402_s20 = sld [smem:[#allocation2 + $0x1]]  ;;  %s404_s21 = sld [smem:[#allocation2 + $0x2]] }
  0x1f   : > { %v168_v1 = vand.u32 127, %v167_v0  ;;  %p153_p0 = scmp.lt.s32.totalorder %s296_s18, 3  ;;  %s406_s22 = sld [smem:[#allocation2 + $0x3]] }
  0x21   : > { %v169_v2 = vadd.s32 128, %v168_v1  ;;  %v170_v3 = vshra.s32 %v168_v1, 4  ;;  %v172_v4 = vand.u32 15, %v168_v1  ;;  %s430_s18 = smov (!%p153_p0, %s296_s18), 3 }
  0x22   : > { %s307_s23 = sshll.u32 %s430_s18, 3 }
  0x23   : > { %v171_v5 = vshra.s32 %v169_v2, 4  ;;  %v173_v6 = vand.u32 15, %v169_v2  ;;  %v174_v7 = vmul.u32 64, %v170_v3  ;;  %v180_v8 = vmul.u32 48, %v172_v4  ;;  %s157_s26 = scalar_lea.vmem %s425_s1, %s307_s23  ;;  %s164_s29 = scalar_lea.vmem %s426_s2, %s307_s23 }
  0x24   : > { %v190_v13 = vstv %s400_s19  ;;  %v193_v14 = vstv %s404_s21  ;;  %v198_v15 = vstv %s402_s20  ;;  %v208_v23 = vld [vmem:[%s157_s26] sm:$0xff] }
  0x25   : > { %v175_v9 = vmul.u32 64, %v171_v5  ;;  %v176_v10 = vshra.s32 %v174_v7, 4  ;;  %v181_v11 = vmul.u32 48, %v173_v6  ;;  %v182_v12 = vshra.s32 %v180_v8, 4  ;;  %v209_v24 = vld [vmem:[%s157_s26 + $0x8] sm:$0xff] }
  0x26   : > { %v203_v20 = vstv %s406_s22 }
  0x27   : > { %v177_v16 = vshra.s32 %v175_v9, 4  ;;  %v178_v17 = vcvt.s32.f32 %v176_v10  ;;  %v183_v18 = vshra.s32 %v181_v11, 4  ;;  %v184_v19 = vcvt.s32.f32 %v182_v12 }
  0x29   : > { %v179_v21 = vcvt.s32.f32 %v177_v16  ;;  %v185_v22 = vcvt.s32.f32 %v183_v18  ;;  %vm191_vm0 = vcmp.ge.f32.partialorder %v184_v19, %v190_v13  ;;  %vm194_vm1 = vcmp.lt.f32.partialorder %v184_v19, %v193_v14 }
  0x2a   : > { %vm196_vm2 = vmand %vm191_vm0, %vm194_vm1  ;;  %vm199_vm3 = vcmp.ge.f32.partialorder %v178_v17, %v198_v15  ;;  %vm204_vm8 = vcmp.lt.f32.partialorder %v178_v17, %v203_v20 }
  0x2b   : > { %vm192_vm4 = vcmp.ge.f32.partialorder %v185_v22, %v190_v13  ;;  %vm195_vm5 = vcmp.lt.f32.partialorder %v185_v22, %v193_v14  ;;  %vm200_vm6 = vcmp.ge.f32.partialorder %v179_v21, %v198_v15  ;;  %vm201_vm7 = vmand %vm196_vm2, %vm199_vm3  ;;  %vm205_vm10 = vcmp.lt.f32.partialorder %v179_v21, %v203_v20 }
  0x2c   : > { %vm197_vm9 = vmand %vm192_vm4, %vm195_vm5 }
  0x2d   : > { %vm202_vm11 = vmand %vm197_vm9, %vm200_vm6 }
  0x2e   : > { %vm206_vm12 = vmand %vm201_vm7, %vm204_vm8 }
  0x2f   : > { %vm207_vm13 = vmand %vm202_vm11, %vm205_vm10 }
  0x30   : > { %vm214_vm14 = vmpackc.low %vm207_vm13, %vm206_vm12 }
  0x31   : > { %v215_v25 = vsel %vm214_vm14, %v208_v23, 0  ;;  %v216_v26 = vsel %vm214_vm14, %v209_v24, 0 }
  0x32   : > { %217 = vst [vmem:[%s164_s29] sm:$0xff] %v215_v25  ;;  %218 = vst [vmem:[%s164_s29 + $0x8] sm:$0xff] %v216_v26 }
  0x33 PF: > { %s13_s9 = sadd.s32 1, %s353_s9  }
  0x34   : > { %p10_p1 = scmp.ge.s32.totalorder %s13_s9, 4  }
  0x36   :  { %12 = sbr.rel (!%p10_p1) target bundleno = 1 (0x1), region = 63 }
  0x3d   :  { %243 = vsyncpa [#allocation3], 1 }
  0x3e   :  { %245 = vsyncpa [#allocation3 + $0x1], 1 }

</bundles_post_ra>
